<compile_context>
chip_gen: v5e
topology: v5e:2x2
jax: 0.10.0
libtpu: 0.0.40
codegen_flags: <defaults>
</compile_context>

<pallas_src>
import jax
import jax.numpy as jnp
from jax import lax
from jax.experimental import pallas as pl
from jax.experimental.pallas import tpu as pltpu


_NEG = -1.0e30   # "minus infinity" for masked logsumexp entries (exp -> exactly 0)
_TINY = 1e-37    # floor so an underflowed exp-product never produces log(0);
                 # diverges from the reference only when the true value is -inf.


def _round_up(x, k):
    return (int(x) + k - 1) // k * k


def _make_ctreeot_kernel(epsilon, thresh, max_steps, masked):
    inv_eps = 1.0 / float(epsilon)
    thresh = float(thresh)
    max_steps = int(max_steps)
    masked = bool(masked)   # static: node-padding active -> mask padded nodes

    def impl(phi_ref, psi_f_ref, to_f_ref, to_b_ref, rmask_ref, cmask_ref, p_ref):
        f32 = jnp.float32

        # ---------------- loop-invariant prologue (hoisted) ----------------
        phi = phi_ref[...] * inv_eps            # phi / eps                (Np, Np)
        npf = -psi_f_ref[...] * inv_eps         # -psi_f / eps             (Np, Np)
        to_f = to_f_ref[...]                    # (Kp, Np)  0/1, zero rows for pad edges
        to_b = to_b_ref[...]                    # (Kp, Np)
        to_f_t = to_f.T                         # (Np, Kp)
        to_b_t = to_b.T                         # (Np, Kp)

        if masked:
            row_ok = rmask_ref[...] > 0.5       # (Np, 1)  True for real node rows
            col_ok = cmask_ref[...] > 0.5       # (1, Np)  True for real node cols
            # Padded rows/cols behave like psi = +inf: exp(-psi/eps) == 0 exactly,
            # so they contribute nothing to the log-matmuls below.
            npf = jnp.where(row_ok, npf, _NEG)
            npf = jnp.where(col_ok, npf, _NEG)
        else:
            row_ok = col_ok = None

        # Constant max-shifts + exps used by the two "log-matmuls".
        # npb is a short-lived prologue temporary (psi_b == psi_f^T); its VMEM
        # is dead (reusable) before the Sinkhorn loop starts.
        npb = npf.T
        rf = jnp.max(npf, axis=1, keepdims=True)            # (Np, 1)
        rb = jnp.max(npb, axis=1, keepdims=True)            # (Np, 1)
        Ef = jnp.exp(npf - rf)                              # (Np, Np) in (0, 1]
        Eb = jnp.exp(npb - rb)                              # (Np, Np) in (0, 1]

        Np = phi.shape[0]
        Kp = to_f.shape[0]

        def lse_rows(x):   # logsumexp over axis 0 -> (1, C)
            m = jnp.max(x, axis=0, keepdims=True)
            return m + jnp.log(jnp.sum(jnp.exp(x - m), axis=0, keepdims=True))

        def lse_cols(x):   # logsumexp over axis 1 -> (R, 1)
            m = jnp.max(x, axis=1, keepdims=True)
            return m + jnp.log(jnp.sum(jnp.exp(x - m), axis=1, keepdims=True))

        def log_matmul_pre(EA, ra, B):
            # out[r,c] = logsumexp_i(A[r,i] + B[i,c]),  EA = exp(A - ra) hoisted.
            cb = jnp.max(B, axis=0, keepdims=True)                          # (1, C)
            M = jnp.dot(EA, jnp.exp(B - cb), preferred_element_type=f32)    # MXU
            return ra + cb + jnp.log(jnp.maximum(M, _TINY))

        init = (jnp.int32(0),                 # step
                jnp.int32(0),                 # converged flag (0/1)
                jnp.zeros((1, Np), f32),      # u
                jnp.zeros((Np, 1), f32),      # v
                jnp.zeros((Np, Kp), f32),     # msg_f
                jnp.zeros((Np, Kp), f32),     # msg_b
                jnp.zeros((Np, Np), f32),     # sum_msg_f
                jnp.zeros((Np, Np), f32))     # sum_msg_b

        def cond(carry):
            step, done = carry[0], carry[1]
            return jnp.logical_and(step < max_steps, done == 0)

        def body(carry):
            step, done, u, v, msg_f, msg_b, smf, smb = carry
            base = smf + smb - phi                                   # (Np, Np)

            arg_u = base - v
            if masked:
                arg_u = jnp.where(row_ok, arg_u, _NEG)               # drop pad rows
            u_n = lse_rows(arg_u)                                    # (1, Np)

            arg_v = base - u_n
            if masked:
                arg_v = jnp.where(col_ok, arg_v, _NEG)               # drop pad cols
            v_n = lse_cols(arg_v)                                    # (Np, 1)

            x_f = (u_n + v_n) - base          # = phi/eps + u + v - smf - smb
            term_f = jnp.dot(x_f, to_f_t, preferred_element_type=f32)      # (Np, Kp)
            bb = -msg_b
            if masked:
                bb = jnp.where(row_ok, bb, _NEG)      # exact shift: pad rows excluded
            # lse_f[j,k] = logsumexp_i(-psi_f[i,j]/eps - msg_b[i,k])
            lse_f = log_matmul_pre(Eb, rb, bb)                              # (Np, Kp)
            mf_n = 0.5 * (msg_f + term_f + lse_f)
            if masked:
                mf_n = jnp.where(row_ok, mf_n, 0.0)   # keep pad-node messages inert
            smf_n = jnp.dot(mf_n, to_f, preferred_element_type=f32)        # (Np, Np)

            x_b = x_f + (smf - smf_n)         # = phi/eps + u + v - smf_n - smb
            term_b = jnp.dot(x_b, to_b_t, preferred_element_type=f32)      # (Np, Kp)
            bf = -mf_n
            if masked:
                bf = jnp.where(row_ok, bf, _NEG)
            # lse_b[j,k] = logsumexp_i(-psi_b[i,j]/eps - msg_f_new[i,k])
            lse_b = log_matmul_pre(Ef, rf, bf)                              # (Np, Kp)
            mb_n = 0.5 * (msg_b + term_b + lse_b)
            if masked:
                mb_n = jnp.where(row_ok, mb_n, 0.0)
            smb_n = jnp.dot(mb_n, to_b, preferred_element_type=f32)        # (Np, Np)

            diff = jnp.abs(u_n - u)                                         # (1, Np)
            if masked:
                diff = jnp.where(col_ok, diff, 0.0)
            ad = jnp.max(diff, axis=-1, keepdims=True)                      # (1, 1)
            conv = jnp.logical_and(ad[0, 0] < thresh, step > 5)
            return (step + 1, conv.astype(jnp.int32), u_n, v_n,
                    mf_n, mb_n, smf_n, smb_n)

        _, _, u, v, _, _, smf, smb = lax.while_loop(cond, body, init)

        logp = smf + smb - phi - u - v
        logp = jnp.minimum(logp, 0.0)
        # One-time in-kernel XLU transpose on VMEM-resident data (cheaper than a
        # post-kernel XLA transpose, which would round-trip (Np,Np) through HBM).
        # TODO(synk): a fully transposed formulation (messages stored as (K,N))
        # would make the natural output orientation correct and remove this pass.
        p_ref[...] = jnp.exp(logp).T

    if masked:
        def kernel(phi_ref, psi_f_ref, to_f_ref, to_b_ref, rmask_ref, cmask_ref, p_ref):
            impl(phi_ref, psi_f_ref, to_f_ref, to_b_ref, rmask_ref, cmask_ref, p_ref)
    else:
        def kernel(phi_ref, psi_f_ref, to_f_ref, to_b_ref, p_ref):
            impl(phi_ref, psi_f_ref, to_f_ref, to_b_ref, None, None, p_ref)
    return kernel


def ctreeot_forward(E1f, E1b, E2f, cost, constr_f, *,
                    max_steps, thresh, epsilon, lamda):
    del E2f  # unused by the reference forward as well
    n, m = cost.shape
    N = n + m

    # --- the module's own padding of cost / constr_f to the (N, N) problem ---
    cost_p = jnp.pad(cost.astype(jnp.float32), ((0, m), (0, n)))
    cf = jnp.pad(constr_f.astype(jnp.float32), ((0, 0), (0, n)),
                 constant_values=0.0)
    cf = jnp.pad(cf, ((0, n), (0, 0)), constant_values=1.0)
    phi = cost_p.T                                      # (N, N)
    psi_f = (lamda * (1.0 - cf)).astype(jnp.float32)    # (N, N); psi_b = psi_f.T in-kernel

    # --- node padding: align N to the (8,128) tile when cheap, else to 8 -----
    n8, n128 = _round_up(N, 8), _round_up(N, 128)
    Np = n128 if n128 * n128 <= 1.25 * n8 * n8 else n8
    masked = Np != N

    # --- edge padding: lane-dense K (all-zero incidence rows; exact) ---------
    dst_f = E1f[..., 1].reshape(-1).astype(jnp.float32)
    dst_b = E1b[..., 1].reshape(-1).astype(jnp.float32)
    K = int(dst_f.shape[0])
    Kp = _round_up(K, 128)   # (256 on v6e/v7x only pays off once K itself is large)
    dst_f = jnp.pad(dst_f, (0, Kp - K), constant_values=-1.0)   # -1 -> all-zero row
    dst_b = jnp.pad(dst_b, (0, Kp - K), constant_values=-1.0)

    idx = jnp.arange(Np, dtype=jnp.float32)
    to_f = (jnp.abs(dst_f[:, None] - idx[None, :]) == 0).astype(jnp.float32)  # (Kp, Np)
    to_b = (jnp.abs(dst_b[:, None] - idx[None, :]) == 0).astype(jnp.float32)  # (Kp, Np)

    phi_p = jnp.pad(phi, ((0, Np - N), (0, Np - N)))
    psi_p = jnp.pad(psi_f, ((0, Np - N), (0, Np - N)))  # pad value irrelevant (masked)

    operands = [phi_p, psi_p, to_f, to_b]
    if masked:
        valid = (jnp.arange(Np) < N).astype(jnp.float32)
        operands += [valid.reshape(Np, 1), valid.reshape(1, Np)]

    # --- VMEM budget: generation-aware (v5e/v6e 128 MiB, v7x 64 MiB) ---------
    need = 4 * (11 * Np * Np + 8 * Np * Kp) + (4 << 20)
    try:
        cap = int(pltpu.get_tpu_info().vmem_capacity_bytes)
    except Exception:
        cap = 64 * 2**20          # conservative: v7x per-TensorCore VMEM
    vmem_limit = int(min(max(need, 32 * 2**20), cap - 8 * 2**20))

    kernel = _make_ctreeot_kernel(epsilon, thresh, max_steps, masked)
    vspec = lambda: pl.BlockSpec(memory_space=pltpu.MemorySpace.VMEM)
    p_full = pl.pallas_call(
        kernel,
        out_shape=jax.ShapeDtypeStruct((Np, Np), jnp.float32),
        in_specs=[vspec() for _ in range(len(operands))],
        out_specs=vspec(),
        compiler_params=pltpu.CompilerParams(vmem_limit_bytes=vmem_limit),
    )(*operands)
    return p_full[:N, :N]


def ctreeot_reference(E1f, E1b, E2f, cost, constr_f, *,
                      max_steps, thresh, epsilon, lamda):
    """Pure-JAX eager transcription of the PyTorch forward (incl. early break)."""
    n, m = cost.shape
    cost = jnp.pad(cost.astype(jnp.float32), ((0, m), (0, n)))
    constr_f = jnp.pad(constr_f.astype(jnp.float32), ((0, 0), (0, n)),
                       constant_values=0.0)
    constr_f = jnp.pad(constr_f, ((0, n), (0, 0)), constant_values=1.0)
    n, m = cost.shape
    phi = cost.T
    psi_f = lamda * (1.0 - constr_f[:, :, None])
    psi_b = jnp.transpose(psi_f, (1, 0, 2))
    idx = jnp.arange(n, dtype=jnp.float32)
    to_f = (jnp.abs(E1f[..., 1].reshape(-1)[:, None] - idx[None, :]) == 0
            ).astype(jnp.float32)
    to_b = (jnp.abs(E1b[..., 1].reshape(-1)[:, None] - idx[None, :]) == 0
            ).astype(jnp.float32)
    to_f_t, to_b_t = to_f.T, to_b.T
    u = jnp.zeros((1, n), jnp.float32)
    v = jnp.zeros((m, 1), jnp.float32)
    msg_f = jnp.zeros((m, E1f.shape[-2]), jnp.float32)
    msg_b = jnp.zeros((m, E1b.shape[-2]), jnp.float32)
    smf = jnp.zeros_like(phi)
    smb = jnp.zeros_like(phi)
    for step in range(max_steps):
        u_prev = u
        u = jax.nn.logsumexp(smf + smb - phi / epsilon - v, axis=-2, keepdims=True)
        v = jax.nn.logsumexp(smf + smb - phi / epsilon - u, axis=-1, keepdims=True)
        term_f = (phi / epsilon + u + v - smf - smb) @ to_f_t
        msg_tilde_f = psi_f / epsilon + msg_b[:, None, :]
        msg_f = 0.5 * (msg_f + term_f + jax.nn.logsumexp(-msg_tilde_f, axis=-3))
        smf = msg_f @ to_f
        term_b = (phi / epsilon + u + v - smf - smb) @ to_b_t
        msg_tilde_b = psi_b / epsilon + msg_f[:, None, :]
        msg_b = 0.5 * (msg_b + term_b + jax.nn.logsumexp(-msg_tilde_b, axis=-3))
        smb = msg_b @ to_b
        absdiff = float(jnp.max(jnp.abs(u - u_prev)))
        if absdiff < thresh and step > 5:
            break
    logp = jnp.minimum(smf + smb - phi / epsilon - u - v, 0.0)
    return jnp.exp(logp).T


if __name__ == "__main__":
    key = jax.random.PRNGKey(0)
    hyper = dict(max_steps=20, thresh=1e-6, epsilon=1.0, lamda=5.0)
    # (n, m, K): case 0 -> N=16 (8-aligned path), case 1 -> N=14 (node-mask path)
    cases = [(6, 10, 16), (5, 9, 12)]
    for ci, (n, m, K) in enumerate(cases):
        N = n + m
        key, k1, k2, k3, k4, k5, k6 = jax.random.split(key, 7)
        cost = jax.random.uniform(k1, (n, m), jnp.float32)
        constr_f = (jax.random.uniform(k2, (m, m)) < 0.5).astype(jnp.float32)
        dst_f = jax.random.randint(k3, (K,), 0, N)
        dst_b = jax.random.randint(k4, (K,), 0, N)
        src_f = jax.random.randint(k5, (K,), 0, N)
        src_b = jax.random.randint(k6, (K,), 0, N)
        E1f = jnp.stack([src_f, dst_f], axis=-1).astype(jnp.float32)   # (K, 2)
        E1b = jnp.stack([src_b, dst_b], axis=-1).astype(jnp.float32)   # (K, 2)
        E2f = E1f  # present in the signature, unused by forward

        p = ctreeot_forward(E1f, E1b, E2f, cost, constr_f, **hyper)
        p = jax.block_until_ready(p)

        p_ref = ctreeot_reference(E1f, E1b, E2f, cost, constr_f, **hyper)
        assert p.shape == (N, N)
        assert bool(jnp.all(jnp.isfinite(p)))
        err = float(jnp.max(jnp.abs(p - p_ref)))
        assert err < 2e-3, f"case {ci}: max abs error vs reference: {err}"
    print("KERNEL_OK")
</pallas_src>

<mosaic_0001>
module attributes {stable_mosaic.version = 11 : i64} {
  func.func @kernel(%arg0: memref<16x16xf32, #tpu.memory_space<vmem>>, %arg1: memref<16x16xf32, #tpu.memory_space<vmem>>, %arg2: memref<128x16xf32, #tpu.memory_space<vmem>>, %arg3: memref<128x16xf32, #tpu.memory_space<vmem>>, %arg4: memref<16x16xf32, #tpu.memory_space<vmem>>) attributes {dimension_semantics = [], scalar_prefetch = 0 : i64, scratch_operands = 0 : i64, tpu.core_type = #tpu.core_type<tc>} {
    %c0 = arith.constant 0 : index
    %c0_0 = arith.constant 0 : index
    %0 = vector.load %arg0[%c0, %c0_0] : memref<16x16xf32, #tpu.memory_space<vmem>>, vector<16x16xf32>
    %cst = arith.constant 1.000000e+00 : f32
    %1 = vector.broadcast %cst : f32 to vector<16x16xf32>
    %2 = arith.mulf %0, %1 : vector<16x16xf32>
    %c0_1 = arith.constant 0 : index
    %c0_2 = arith.constant 0 : index
    %3 = vector.load %arg1[%c0_1, %c0_2] : memref<16x16xf32, #tpu.memory_space<vmem>>, vector<16x16xf32>
    %cst_3 = arith.constant 0.000000e+00 : f32
    %4 = vector.broadcast %cst_3 : f32 to vector<16x16xf32>
    %5 = arith.subf %4, %3 : vector<16x16xf32>
    %cst_4 = arith.constant 1.000000e+00 : f32
    %6 = vector.broadcast %cst_4 : f32 to vector<16x16xf32>
    %7 = arith.mulf %5, %6 : vector<16x16xf32>
    %c0_5 = arith.constant 0 : index
    %c0_6 = arith.constant 0 : index
    %8 = vector.load %arg2[%c0_5, %c0_6] : memref<128x16xf32, #tpu.memory_space<vmem>>, vector<128x16xf32>
    %c0_7 = arith.constant 0 : index
    %c0_8 = arith.constant 0 : index
    %9 = vector.load %arg3[%c0_7, %c0_8] : memref<128x16xf32, #tpu.memory_space<vmem>>, vector<128x16xf32>
    %10 = tpu.transpose %8, [1, 0] : vector<128x16xf32> -> vector<16x128xf32>
    %11 = tpu.transpose %9, [1, 0] : vector<128x16xf32> -> vector<16x128xf32>
    %12 = tpu.transpose %7, [1, 0] : vector<16x16xf32> -> vector<16x16xf32>
    %cst_9 = arith.constant dense<0xFF800000> : vector<16xf32>
    %13 = vector.multi_reduction <maximumf>, %7, %cst_9 [1] : vector<16x16xf32> to vector<16xf32>
    %14 = vector.shape_cast %13 : vector<16xf32> to vector<16x1xf32>
    %cst_10 = arith.constant dense<0xFF800000> : vector<16xf32>
    %15 = vector.multi_reduction <maximumf>, %12, %cst_10 [1] : vector<16x16xf32> to vector<16xf32>
    %16 = vector.shape_cast %15 : vector<16xf32> to vector<16x1xf32>
    %17 = vector.broadcast %14 : vector<16x1xf32> to vector<16x16xf32>
    %18 = arith.subf %7, %17 : vector<16x16xf32>
    %19 = math.exp %18 : vector<16x16xf32>
    %20 = vector.broadcast %16 : vector<16x1xf32> to vector<16x16xf32>
    %21 = arith.subf %12, %20 : vector<16x16xf32>
    %22 = math.exp %21 : vector<16x16xf32>
    %cst_11 = arith.constant 0.000000e+00 : f32
    %23 = vector.broadcast %cst_11 : f32 to vector<1x16xf32>
    %cst_12 = arith.constant 0.000000e+00 : f32
    %24 = vector.broadcast %cst_12 : f32 to vector<16x1xf32>
    %cst_13 = arith.constant 0.000000e+00 : f32
    %25 = vector.broadcast %cst_13 : f32 to vector<16x128xf32>
    %cst_14 = arith.constant 0.000000e+00 : f32
    %26 = vector.broadcast %cst_14 : f32 to vector<16x128xf32>
    %cst_15 = arith.constant 0.000000e+00 : f32
    %27 = vector.broadcast %cst_15 : f32 to vector<16x16xf32>
    %cst_16 = arith.constant 0.000000e+00 : f32
    %28 = vector.broadcast %cst_16 : f32 to vector<16x16xf32>
    %c0_i32 = arith.constant 0 : i32
    %c0_i32_17 = arith.constant 0 : i32
    %29:8 = scf.while (%arg5 = %c0_i32, %arg6 = %c0_i32_17, %arg7 = %23, %arg8 = %24, %arg9 = %25, %arg10 = %26, %arg11 = %27, %arg12 = %28) : (i32, i32, vector<1x16xf32>, vector<16x1xf32>, vector<16x128xf32>, vector<16x128xf32>, vector<16x16xf32>, vector<16x16xf32>) -> (i32, i32, vector<1x16xf32>, vector<16x1xf32>, vector<16x128xf32>, vector<16x128xf32>, vector<16x16xf32>, vector<16x16xf32>) {
      %c20_i32 = arith.constant 20 : i32
      %41 = arith.cmpi slt, %arg5, %c20_i32 : i32
      %c0_i32_21 = arith.constant 0 : i32
      %42 = arith.cmpi eq, %arg6, %c0_i32_21 : i32
      %43 = arith.andi %41, %42 : i1
      scf.condition(%43) %arg5, %arg6, %arg7, %arg8, %arg9, %arg10, %arg11, %arg12 : i32, i32, vector<1x16xf32>, vector<16x1xf32>, vector<16x128xf32>, vector<16x128xf32>, vector<16x16xf32>, vector<16x16xf32>
    } do {
    ^bb0(%arg5: i32, %arg6: i32, %arg7: vector<1x16xf32>, %arg8: vector<16x1xf32>, %arg9: vector<16x128xf32>, %arg10: vector<16x128xf32>, %arg11: vector<16x16xf32>, %arg12: vector<16x16xf32>):
      %41 = arith.addf %arg11, %arg12 : vector<16x16xf32>
      %42 = arith.subf %41, %2 : vector<16x16xf32>
      %43 = vector.broadcast %arg8 : vector<16x1xf32> to vector<16x16xf32>
      %44 = arith.subf %42, %43 : vector<16x16xf32>
      %cst_21 = arith.constant dense<0xFF800000> : vector<16xf32>
      %45 = vector.multi_reduction <maximumf>, %44, %cst_21 [0] : vector<16x16xf32> to vector<16xf32>
      %46 = vector.shape_cast %45 : vector<16xf32> to vector<1x16xf32>
      %47 = vector.broadcast %46 : vector<1x16xf32> to vector<16x16xf32>
      %48 = arith.subf %44, %47 : vector<16x16xf32>
      %49 = math.exp %48 : vector<16x16xf32>
      %cst_22 = arith.constant dense<0.000000e+00> : vector<16xf32>
      %50 = vector.multi_reduction <add>, %49, %cst_22 [0] : vector<16x16xf32> to vector<16xf32>
      %51 = vector.shape_cast %50 : vector<16xf32> to vector<1x16xf32>
      %52 = math.log %51 : vector<1x16xf32>
      %53 = arith.addf %46, %52 : vector<1x16xf32>
      %54 = vector.broadcast %53 : vector<1x16xf32> to vector<16x16xf32>
      %55 = arith.subf %42, %54 : vector<16x16xf32>
      %cst_23 = arith.constant dense<0xFF800000> : vector<16xf32>
      %56 = vector.multi_reduction <maximumf>, %55, %cst_23 [1] : vector<16x16xf32> to vector<16xf32>
      %57 = vector.shape_cast %56 : vector<16xf32> to vector<16x1xf32>
      %58 = vector.broadcast %57 : vector<16x1xf32> to vector<16x16xf32>
      %59 = arith.subf %55, %58 : vector<16x16xf32>
      %60 = math.exp %59 : vector<16x16xf32>
      %cst_24 = arith.constant dense<0.000000e+00> : vector<16xf32>
      %61 = vector.multi_reduction <add>, %60, %cst_24 [1] : vector<16x16xf32> to vector<16xf32>
      %62 = vector.shape_cast %61 : vector<16xf32> to vector<16x1xf32>
      %63 = math.log %62 : vector<16x1xf32>
      %64 = arith.addf %57, %63 : vector<16x1xf32>
      %65 = vector.broadcast %53 : vector<1x16xf32> to vector<16x16xf32>
      %66 = vector.broadcast %64 : vector<16x1xf32> to vector<16x16xf32>
      %67 = arith.addf %65, %66 : vector<16x16xf32>
      %68 = arith.subf %67, %42 : vector<16x16xf32>
      %cst_25 = arith.constant dense<0.000000e+00> : vector<16x128xf32>
      %69 = tpu.matmul %68, %10, %cst_25 {dimension_numbers = #tpu.dot_dimension_numbers<[1], [0], [0], [1], [0, 0, 1, 1], [], []>} : vector<16x16xf32>, vector<16x128xf32>, vector<16x128xf32> -> vector<16x128xf32>
      %cst_26 = arith.constant 0.000000e+00 : f32
      %70 = vector.broadcast %cst_26 : f32 to vector<16x128xf32>
      %71 = arith.subf %70, %arg10 : vector<16x128xf32>
      %cst_27 = arith.constant dense<0xFF800000> : vector<128xf32>
      %72 = vector.multi_reduction <maximumf>, %71, %cst_27 [0] : vector<16x128xf32> to vector<128xf32>
      %73 = vector.shape_cast %72 : vector<128xf32> to vector<1x128xf32>
      %74 = vector.broadcast %73 : vector<1x128xf32> to vector<16x128xf32>
      %75 = arith.subf %71, %74 : vector<16x128xf32>
      %76 = math.exp %75 : vector<16x128xf32>
      %cst_28 = arith.constant dense<0.000000e+00> : vector<16x128xf32>
      %77 = tpu.matmul %22, %76, %cst_28 {dimension_numbers = #tpu.dot_dimension_numbers<[1], [0], [0], [1], [0, 0, 1, 1], [], []>} : vector<16x16xf32>, vector<16x128xf32>, vector<16x128xf32> -> vector<16x128xf32>
      %78 = vector.broadcast %16 : vector<16x1xf32> to vector<16x128xf32>
      %79 = vector.broadcast %73 : vector<1x128xf32> to vector<16x128xf32>
      %80 = arith.addf %78, %79 : vector<16x128xf32>
      %cst_29 = arith.constant 9.99999991E-38 : f32
      %81 = vector.broadcast %cst_29 : f32 to vector<16x128xf32>
      %82 = arith.maximumf %77, %81 : vector<16x128xf32>
      %83 = math.log %82 : vector<16x128xf32>
      %84 = arith.addf %80, %83 : vector<16x128xf32>
      %85 = arith.addf %arg9, %69 : vector<16x128xf32>
      %86 = arith.addf %85, %84 : vector<16x128xf32>
      %cst_30 = arith.constant 5.000000e-01 : f32
      %87 = vector.broadcast %cst_30 : f32 to vector<16x128xf32>
      %88 = arith.mulf %87, %86 : vector<16x128xf32>
      %cst_31 = arith.constant dense<0.000000e+00> : vector<16x16xf32>
      %89 = tpu.matmul %88, %8, %cst_31 {dimension_numbers = #tpu.dot_dimension_numbers<[1], [0], [0], [1], [0, 0, 1, 1], [], []>} : vector<16x128xf32>, vector<128x16xf32>, vector<16x16xf32> -> vector<16x16xf32>
      %90 = arith.subf %arg11, %89 : vector<16x16xf32>
      %91 = arith.addf %68, %90 : vector<16x16xf32>
      %cst_32 = arith.constant dense<0.000000e+00> : vector<16x128xf32>
      %92 = tpu.matmul %91, %11, %cst_32 {dimension_numbers = #tpu.dot_dimension_numbers<[1], [0], [0], [1], [0, 0, 1, 1], [], []>} : vector<16x16xf32>, vector<16x128xf32>, vector<16x128xf32> -> vector<16x128xf32>
      %cst_33 = arith.constant 0.000000e+00 : f32
      %93 = vector.broadcast %cst_33 : f32 to vector<16x128xf32>
      %94 = arith.subf %93, %88 : vector<16x128xf32>
      %cst_34 = arith.constant dense<0xFF800000> : vector<128xf32>
      %95 = vector.multi_reduction <maximumf>, %94, %cst_34 [0] : vector<16x128xf32> to vector<128xf32>
      %96 = vector.shape_cast %95 : vector<128xf32> to vector<1x128xf32>
      %97 = vector.broadcast %96 : vector<1x128xf32> to vector<16x128xf32>
      %98 = arith.subf %94, %97 : vector<16x128xf32>
      %99 = math.exp %98 : vector<16x128xf32>
      %cst_35 = arith.constant dense<0.000000e+00> : vector<16x128xf32>
      %100 = tpu.matmul %19, %99, %cst_35 {dimension_numbers = #tpu.dot_dimension_numbers<[1], [0], [0], [1], [0, 0, 1, 1], [], []>} : vector<16x16xf32>, vector<16x128xf32>, vector<16x128xf32> -> vector<16x128xf32>
      %101 = vector.broadcast %14 : vector<16x1xf32> to vector<16x128xf32>
      %102 = vector.broadcast %96 : vector<1x128xf32> to vector<16x128xf32>
      %103 = arith.addf %101, %102 : vector<16x128xf32>
      %cst_36 = arith.constant 9.99999991E-38 : f32
      %104 = vector.broadcast %cst_36 : f32 to vector<16x128xf32>
      %105 = arith.maximumf %100, %104 : vector<16x128xf32>
      %106 = math.log %105 : vector<16x128xf32>
      %107 = arith.addf %103, %106 : vector<16x128xf32>
      %108 = arith.addf %arg10, %92 : vector<16x128xf32>
      %109 = arith.addf %108, %107 : vector<16x128xf32>
      %cst_37 = arith.constant 5.000000e-01 : f32
      %110 = vector.broadcast %cst_37 : f32 to vector<16x128xf32>
      %111 = arith.mulf %110, %109 : vector<16x128xf32>
      %cst_38 = arith.constant dense<0.000000e+00> : vector<16x16xf32>
      %112 = tpu.matmul %111, %9, %cst_38 {dimension_numbers = #tpu.dot_dimension_numbers<[1], [0], [0], [1], [0, 0, 1, 1], [], []>} : vector<16x128xf32>, vector<128x16xf32>, vector<16x16xf32> -> vector<16x16xf32>
      %113 = arith.subf %53, %arg7 : vector<1x16xf32>
      %114 = math.absf %113 : vector<1x16xf32>
      %cst_39 = arith.constant dense<0xFF800000> : vector<1xf32>
      %115 = vector.multi_reduction <maximumf>, %114, %cst_39 [1] : vector<1x16xf32> to vector<1xf32>
      %116 = vector.shape_cast %115 : vector<1xf32> to vector<1x1xf32>
      %117 = vector.extract %116[0, 0] : f32 from vector<1x1xf32>
      %cst_40 = arith.constant 9.99999997E-7 : f32
      %118 = arith.cmpf olt, %117, %cst_40 : f32
      %c5_i32 = arith.constant 5 : i32
      %119 = arith.cmpi sgt, %arg5, %c5_i32 : i32
      %120 = arith.andi %118, %119 : i1
      %c1_i32 = arith.constant 1 : i32
      %121 = arith.addi %arg5, %c1_i32 : i32
      %122 = arith.extui %120 : i1 to i32
      scf.yield %121, %122, %53, %64, %88, %111, %89, %112 : i32, i32, vector<1x16xf32>, vector<16x1xf32>, vector<16x128xf32>, vector<16x128xf32>, vector<16x16xf32>, vector<16x16xf32>
    }
    %30 = arith.addf %29#6, %29#7 : vector<16x16xf32>
    %31 = arith.subf %30, %2 : vector<16x16xf32>
    %32 = vector.broadcast %29#2 : vector<1x16xf32> to vector<16x16xf32>
    %33 = arith.subf %31, %32 : vector<16x16xf32>
    %34 = vector.broadcast %29#3 : vector<16x1xf32> to vector<16x16xf32>
    %35 = arith.subf %33, %34 : vector<16x16xf32>
    %cst_18 = arith.constant 0.000000e+00 : f32
    %36 = vector.broadcast %cst_18 : f32 to vector<16x16xf32>
    %37 = arith.minimumf %35, %36 : vector<16x16xf32>
    %38 = math.exp %37 : vector<16x16xf32>
    %39 = tpu.transpose %38, [1, 0] : vector<16x16xf32> -> vector<16x16xf32>
    %c0_19 = arith.constant 0 : index
    %c0_20 = arith.constant 0 : index
    %40 = vector.load %arg4[%c0_19, %c0_20] : memref<16x16xf32, #tpu.memory_space<vmem>>, vector<16x16xf32>
    tpu.vector_store %arg4[%c0_19, %c0_20], %39 {strides = array<i32>} : memref<16x16xf32, #tpu.memory_space<vmem>>, vector<16x16xf32>,
    return
  }
}

</mosaic_0001>

<bundles_post_ra>
// kernel: tpu_custom_call.1
= control target key start
LH: loop header
LB: loop body
LE: loop exit
PB: predicated region body
PF: predicated region fallthrough
CT: control target
= control target key end

     0   :  { %s1453_s0 = inlined_call_operand.vmem [shape: f32[16,16], index: 0, kind: input, shape index: {}]   ;;  %s1454_s1 = inlined_call_operand.vmem [shape: f32[16,16], index: 1, kind: input, shape index: {}]   ;;  %s1455_s2 = inlined_call_operand.vmem [shape: f32[128,16], index: 2, kind: input, shape index: {}]   ;;  %s1456_s3 = inlined_call_operand.vmem [shape: f32[128,16], index: 3, kind: input, shape index: {}]   ;;  %s1457_s4 = inlined_call_operand.hbm [shape: f32[16,16], index: 4, kind: output, shape index: {}]  }
   0x1   :  { %v20_v0 = vld [vmem:[%s1454_s1] sm:$0xff] }
   0x2   :  { %9 = vsyncpa [#allocation3], 0  ;;  %v22_v1 = vsub.f32 0.0, %v20_v0  ;;  %v21_v2 = vld [vmem:[%s1454_s1 + $0x8] sm:$0xff]  ;;  %vm88_vm0 = vcmask 130048   ;;  %v995_v17 = vld [vmem:[%s1453_s0] sm:$0xff] }
   0x3   :  { %v23_v3 = vsub.f32 0.0, %v21_v2  ;;  %v1000_v18 = vld [vmem:[%s1453_s0 + $0x8] sm:$0xff]  ;;  %v1005_v19 = vld [vmem:[%s1455_s2] sm:$0xff]  ;;  %v1015_v21 = vld [vmem:[%s1455_s2 + $0x10] sm:$0xff]  ;;  %v1174_v60 = vmov 0.0   ;;  %v1176_v61 = vmov 0.0  }
   0x4   :  { %56 = vxpose.xlu0.b32.start [1/2] (short) (narrow) %v22_v1, 16  ;;  %v89_v4 = vsel %vm88_vm0, %v22_v1, -inf  ;;  %1464 = vst [vmem:[#allocation5_spill] sm:$0xff] %v1005_v19  ;;  %v1010_v20 = vld [vmem:[%s1455_s2 + $0x8] sm:$0xff]  ;;  %v1020_v22 = vld [vmem:[%s1455_s2 + $0x18] sm:$0xff]  ;;  %v1025_v23 = vld [vmem:[%s1455_s2 + $0x20] sm:$0xff] }
   0x5   :  { %90 = vmax.xlane.f32.xlu1 %v89_v4  ;;  %v92_v5 = vsel %vm88_vm0, %v23_v3, -inf  ;;  %1465 = vst [vmem:[#allocation6_spill] sm:$0xff] %v1010_v20  ;;  %v1030_v24 = vld [vmem:[%s1455_s2 + $0x28] sm:$0xff]  ;;  %v1035_v25 = vld [vmem:[%s1455_s2 + $0x30] sm:$0xff]  ;;  %v1040_v26 = vld [vmem:[%s1455_s2 + $0x38] sm:$0xff]  ;;  %v1178_v62 = vmov 0.0  }
   0x6   :  { %1466 = vst [vmem:[#allocation7_spill] sm:$0xff] %v1015_v21  ;;  %v1045_v27 = vld [vmem:[%s1455_s2 + $0x40] sm:$0xff]  ;;  %v1050_v28 = vld [vmem:[%s1455_s2 + $0x48] sm:$0xff]  ;;  %v1055_v29 = vld [vmem:[%s1455_s2 + $0x50] sm:$0xff]  ;;  %v1180_v63 = vmov 0.0   ;;  %v1182_v0 = vmov 0.0  }
   0x7   :  { %1467 = vst [vmem:[#allocation8_spill] sm:$0xff] %v1020_v22  ;;  %v1060_v30 = vld [vmem:[%s1455_s2 + $0x58] sm:$0xff]  ;;  %v1065_v31 = vld [vmem:[%s1455_s2 + $0x60] sm:$0xff]  ;;  %v1070_v32 = vld [vmem:[%s1455_s2 + $0x68] sm:$0xff]  ;;  %v1186_v2 = vmov 0.0   ;;  %v1190_v4 = vmov 0.0  }
   0x8   :  { %1468 = vst [vmem:[#allocation9_spill] sm:$0xff] %v1025_v23  ;;  %v1075_v33 = vld [vmem:[%s1455_s2 + $0x70] sm:$0xff]  ;;  %v1080_v34 = vld [vmem:[%s1455_s2 + $0x78] sm:$0xff]  ;;  %v1087_v36 = vld [vmem:[%s1456_s3] sm:$0xff] }
   0x9   :  { %1469 = vst [vmem:[#allocation10_spill] sm:$0xff] %v1030_v24  ;;  %v1092_v37 = vld [vmem:[%s1456_s3 + $0x8] sm:$0xff]  ;;  %v1097_v38 = vld [vmem:[%s1456_s3 + $0x10] sm:$0xff]  ;;  %v1102_v39 = vld [vmem:[%s1456_s3 + $0x18] sm:$0xff] }
   0xa   :  { %v1107_v40 = vld [vmem:[%s1456_s3 + $0x20] sm:$0xff]  ;;  %v1112_v41 = vld [vmem:[%s1456_s3 + $0x28] sm:$0xff]  ;;  %v1117_v42 = vld [vmem:[%s1456_s3 + $0x30] sm:$0xff] }
   0xb   :  { %v1122_v43 = vld [vmem:[%s1456_s3 + $0x38] sm:$0xff]  ;;  %v1127_v44 = vld [vmem:[%s1456_s3 + $0x40] sm:$0xff]  ;;  %v1132_v45 = vld [vmem:[%s1456_s3 + $0x48] sm:$0xff] }
   0xc   :  { %57 = vxpose.xlu0.b32.end [2/2] (short) (narrow) %v23_v3, 16  ;;  %v1137_v46 = vld [vmem:[%s1456_s3 + $0x50] sm:$0xff]  ;;  %v1142_v47 = vld [vmem:[%s1456_s3 + $0x58] sm:$0xff]  ;;  %v1147_v48 = vld [vmem:[%s1456_s3 + $0x60] sm:$0xff] }
   0xd   :  { %93 = vmax.xlane.f32.xlu1 %v92_v5  ;;  %v1152_v49 = vld [vmem:[%s1456_s3 + $0x68] sm:$0xff]  ;;  %v1157_v50 = vld [vmem:[%s1456_s3 + $0x70] sm:$0xff]  ;;  %v1162_v51 = vld [vmem:[%s1456_s3 + $0x78] sm:$0xff]  ;;  %v1192_v5 = vmov 0.0   ;;  %s1196_s3 = smov 0  }
  0x78   :  { %v984_v10 = vpop.xlane.xlu1 %90 }
  0x79   :  { %v101_v11 = vsub.f32 %v22_v1, %v984_v10  ;;  %v1184_v1 = vmov 0.0  }
  0x7b   :  { %v103_v12 = vmul.f32 1.442695, %v101_v11 }
  0x7d   :  { %782 = vpow2.f32 %v103_v12 }
  0x80   :  { %v987_v13 = vpop.xlane.xlu1 %93 }
  0x81   :  { %v102_v14 = vsub.f32 %v23_v3, %v987_v13  ;;  %v1188_v3 = vmov 0.0  }
  0x83   :  { %v990_v15 = vpop.eup %782  ;;  %v105_v16 = vmul.f32 1.442695, %v102_v14 }
  0x85   :  { %784 = vpow2.f32 %v105_v16 }
  0x8b   :  { %v1082_v35 = vpop.eup %784 }
  0xa8   :  { %v72_v6 = vpop.trf.xlu0 }
  0xa9   :  { %v95_v7 = vsel %vm88_vm0, %v72_v6, -inf }
  0xaa   :  { %96 = vmax.xlane.f32.xlu2 %v95_v7 }
  0xb0   :  { %v73_v8 = vpop.trf.xlu0 }
  0xb1   :  { %v98_v9 = vsel %vm88_vm0, %v73_v8, -inf }
  0xb2   :  { %99 = vmax.xlane.f32.xlu2 %v98_v9 }
 0x11d   :  { %v1164_v52 = vpop.xlane.xlu2 %96 }
 0x11e   :  { %v107_v53 = vsub.f32 %v72_v6, %v1164_v52  ;;  %v1194_v6 = vmov 0.0  }
 0x120   :  { %v109_v54 = vmul.f32 1.442695, %v107_v53 }
 0x122   :  { %786 = vpow2.f32 %v109_v54 }
 0x125   :  { %v1167_v55 = vpop.xlane.xlu2 %99 }
 0x126   :  { %v108_v56 = vsub.f32 %v73_v8, %v1167_v55 }
 0x128   :  { %v1170_v57 = vpop.eup %786  ;;  %v111_v58 = vmul.f32 1.442695, %v108_v56 }
 0x12a   :  { %788 = vpow2.f32 %v111_v58 }
 0x130   :  { %v1172_v59 = vpop.eup %788 }
 0x131 LB: > { %v1470_v24 = vld [vmem:[#allocation10_spill] sm:$0xff]  ;;  %v1471_v23 = vld [vmem:[#allocation9_spill] sm:$0xff]  ;;  %v1472_v22 = vld [vmem:[#allocation8_spill] sm:$0xff]  ;;  %639 = vmatpush.xpose.msk.msra.mxu0 %vm88_vm0, %v1080_v34  ;;  %333 = vmatpush.msra.mxu2 %v1080_v34  ;;  %v133_v7 = vadd.f32 %v904_v61, %v912_v63  ;;  %v134_v8 = vadd.f32 %v900_v60, %v908_v62  ;;  %s530_s29 = sadd.s32 1, %s944_s3   ;;  %p527_p0 = scmp.gt.s32.totalorder %s944_s3, 5  ;;  %v920_v1 = vphi %v1184_v1, %v495_v1   ;;  %v916_v0 = vphi %v1182_v0, %v496_v0   ;;  %v912_v63 = vphi %v1180_v63, %v1483_v63   ;;  %v908_v62 = vphi %v1178_v62, %v1482_v62   ;;  %v904_v61 = vphi %v1176_v61, %v1481_v61   ;;  %v900_v60 = vphi %v1174_v60, %v1480_v60   ;;  %s944_s3 = sphi %s1196_s3, %s1487_s3   ;;  %v940_v6 = vphi %v1194_v6, %v1486_v6   ;;  %v936_v5 = vphi %v1192_v5, %v1485_v5   ;;  %v932_v4 = vphi %v1190_v4, %v1484_v4   ;;  %v928_v3 = vphi %v1188_v3, %v1357_v3   ;;  %v924_v2 = vphi %v1186_v2, %v1361_v2  }
 0x132   : > { %v1473_v21 = vld [vmem:[#allocation7_spill] sm:$0xff]  ;;  %v1474_v20 = vld [vmem:[#allocation6_spill] sm:$0xff]  ;;  %v1475_v19 = vld [vmem:[#allocation5_spill] sm:$0xff]  ;;  %659 = vmatpush.xpose.msk.msra.mxu3 %vm88_vm0, %v1162_v51  ;;  %p1405_p3 = scmp.lt.s32.totalorder %s530_s29, 20  ;;  %s1487_s3 = smov %s530_s29 }
 0x133   : > { %334 = vmatpush.msra.mxu2 %v1075_v33  ;;  %v1238_v9 = vsub.f32 %v133_v7, %v995_v17  ;;  %v1241_v11 = vsub.f32 %v134_v8, %v1000_v18 }
 0x135   : > { %640 = vmatpush.xpose.msk.msra.mxu0 %vm88_vm0, %v1075_v33  ;;  %335 = vmatpush.msra.mxu2 %v1070_v32  ;;  %v137_v12 = vsub.f32 %v1238_v9, %v936_v5  ;;  %v138_v14 = vsub.f32 %v1241_v11, %v932_v4 }
 0x136   : > { %660 = vmatpush.xpose.msk.msra.mxu3 %vm88_vm0, %v1157_v50 }
 0x137   : > { %336 = vmatpush.msra.mxu2 %v1065_v31  ;;  %v139_v16 = vsel %vm88_vm0, %v137_v12, -inf  ;;  %v140_v53 = vsel %vm88_vm0, %v138_v14, -inf }
 0x138   : > { %v141_v54 = vmax.f32 %v139_v16, %v140_v53 }
 0x139   : > { %641 = vmatpush.xpose.msk.msra.mxu0 %vm88_vm0, %v1070_v32  ;;  %337 = vmatpush.msra.mxu2 %v1060_v30 }
 0x13a   : > { %661 = vmatpush.xpose.msk.msra.mxu3 %vm88_vm0, %v1152_v49  ;;  %v142_v56 = vrot.slane %v141_v54, 4 }
 0x13b   : > { %338 = vmatpush.msra.mxu2 %v1055_v29 }
 0x13c   : > { %v143_v58 = vmax.f32 %v141_v54, %v142_v56 }
 0x13d   : > { %642 = vmatpush.xpose.msk.msra.mxu0 %vm88_vm0, %v1065_v31  ;;  %339 = vmatpush.msra.mxu2 %v1050_v28 }
 0x13e   : > { %662 = vmatpush.xpose.msk.msra.mxu3 %vm88_vm0, %v1147_v48  ;;  %v144_v60 = vrot.slane %v143_v58, 2 }
 0x13f   : > { %340 = vmatpush.msra.mxu2 %v1045_v27 }
 0x140   : > { %v145_v61 = vmax.f32 %v143_v58, %v144_v60 }
 0x141   : > { %643 = vmatpush.xpose.msk.msra.mxu0 %vm88_vm0, %v1060_v30  ;;  %341 = vmatpush.msra.mxu2 %v1040_v26 }
 0x142   : > { %663 = vmatpush.xpose.msk.msra.mxu3 %vm88_vm0, %v1142_v47  ;;  %v146_v4 = vrot.slane %v145_v61, 1 }
 0x143   : > { %342 = vmatpush.msra.mxu2 %v1035_v25 }
 0x144   : > { %v147_v5 = vmax.f32 %v145_v61, %v146_v4 }
 0x145   : > { %644 = vmatpush.xpose.msk.msra.mxu0 %vm88_vm0, %v1055_v29  ;;  %343 = vmatpush.msra.mxu2 %v1470_v24 }
 0x146   : > { %664 = vmatpush.xpose.msk.msra.mxu3 %vm88_vm0, %v1137_v46  ;;  %v148_v7 = vsub.f32 %v137_v12, %v147_v5  ;;  %v149_v8 = vsub.f32 %v138_v14, %v147_v5 }
 0x147   : > { %344 = vmatpush.msra.mxu2 %v1471_v23 }
 0x148   : > { %v150_v16 = vmul.f32 1.442695, %v148_v7  ;;  %v152_v53 = vmul.f32 1.442695, %v149_v8 }
 0x149   : > { %645 = vmatpush.xpose.msk.msra.mxu0 %vm88_vm0, %v1050_v28  ;;  %345 = vmatpush.msra.mxu2 %v1472_v22 }
 0x14a   : > { %665 = vmatpush.xpose.msk.msra.mxu3 %vm88_vm0, %v1132_v45  ;;  %790 = vpow2.f32 %v150_v16 }
 0x14b   : > { %346 = vmatpush.msra.mxu2 %v1473_v21  ;;  %792 = vpow2.f32 %v152_v53 }
 0x14d   : > { %646 = vmatpush.xpose.msk.msra.mxu0 %vm88_vm0, %v1045_v27  ;;  %347 = vmatpush.msra.mxu2 %v1474_v20 }
 0x14e   : > { %666 = vmatpush.xpose.msk.msra.mxu3 %vm88_vm0, %v1127_v44 }
 0x14f   : > { %348 = vmatpush.msra.mxu2 %v1475_v19 }
 0x150   : > { %v791_v12 = vpop.eup %790 }
 0x151   : > { %647 = vmatpush.xpose.msk.msra.mxu0 %vm88_vm0, %v1040_v26  ;;  %v793_v14 = vpop.eup %792  ;;  %v154_v54 = vsel %vm88_vm0, %v791_v12, 0.0 }
 0x152   : > { %667 = vmatpush.xpose.msk.msra.mxu3 %vm88_vm0, %v1122_v43  ;;  %v155_v56 = vsel %vm88_vm0, %v793_v14, 0.0 }
 0x153   : > { %v156_v58 = vadd.f32 %v155_v56, %v154_v54 }
 0x155   : > { %648 = vmatpush.xpose.msk.msra.mxu0 %vm88_vm0, %v1035_v25  ;;  %v157_v60 = vrot.slane %v156_v58, 4 }
 0x156   : > { %668 = vmatpush.xpose.msk.msra.mxu3 %vm88_vm0, %v1117_v42 }
 0x157   : > { %v158_v61 = vadd.f32 %v157_v60, %v156_v58 }
 0x159   : > { %649 = vmatpush.xpose.msk.msra.mxu0 %vm88_vm0, %v1470_v24  ;;  %v159_v4 = vrot.slane %v158_v61, 2 }
 0x15a   : > { %669 = vmatpush.xpose.msk.msra.mxu3 %vm88_vm0, %v1112_v41 }
 0x15b   : > { %v160_v7 = vadd.f32 %v159_v4, %v158_v61 }
 0x15d   : > { %650 = vmatpush.xpose.msk.msra.mxu0 %vm88_vm0, %v1471_v23  ;;  %v161_v8 = vrot.slane %v160_v7, 1 }
 0x15e   : > { %670 = vmatpush.xpose.msk.msra.mxu3 %vm88_vm0, %v1107_v40 }
 0x15f   : > { %v162_v16 = vadd.f32 %v161_v8, %v160_v7 }
 0x161   : > { %651 = vmatpush.xpose.msk.msra.mxu0 %vm88_vm0, %v1472_v22  ;;  %794 = vlog2.f32 %v162_v16 }
 0x162   : > { %671 = vmatpush.xpose.msk.msra.mxu3 %vm88_vm0, %v1102_v39 }
 0x165   : > { %652 = vmatpush.xpose.msk.msra.mxu0 %vm88_vm0, %v1473_v21 }
 0x166   : > { %672 = vmatpush.xpose.msk.msra.mxu3 %vm88_vm0, %v1097_v38 }
 0x167   : > { %v795_v53 = vpop.eup %794 }
 0x168   : > { %v164_v12 = vmul.f32 0.6931472, %v795_v53 }
 0x169   : > { %653 = vmatpush.xpose.msk.msra.mxu0 %vm88_vm0, %v1474_v20  ;;  %v273_v20 = vsub.f32 0.0, %v920_v1 }
 0x16a   : > { %673 = vmatpush.xpose.msk.msra.mxu3 %vm88_vm0, %v1092_v37  ;;  %v1316_v14 = vadd.f32 %v164_v12, %v147_v5  }
 0x16c   : > { %v166_v54 = vsub.f32 %v1238_v9, %v1316_v14  ;;  %v167_v58 = vsub.f32 %v1241_v11, %v1316_v14 }
 0x16d   : > { %654 = vmatpush.xpose.msk.msra.mxu0 %vm88_vm0, %v1475_v19 }
 0x16e   : > { %674 = vmatpush.xpose.msk.msra.mxu3 %vm88_vm0, %v1087_v36  ;;  %v168_v56 = vsel %vm88_vm0, %v166_v54, -inf  ;;  %v171_v60 = vsel %vm88_vm0, %v167_v58, -inf }
 0x16f   : > { %169 = vmax.xlane.f32.xlu0 %v168_v56 }
 0x177   : > { %172 = vmax.xlane.f32.xlu0 %v171_v60  ;;  %v274_v60 = vsub.f32 0.0, %v916_v0 }
 0x179   : > { %v275_v21 = vmax.f32 %v273_v20, %v274_v60 }
 0x1e2   : > { %v170_v5 = vpop.xlane.xlu0 %169 }
 0x1e3   : > { %v174_v61 = vsub.f32 %v166_v54, %v170_v5  ;;  %v276_v54 = vrot.slane %v275_v21, 4 }
 0x1e5   : > { %v176_v4 = vmul.f32 1.442695, %v174_v61  ;;  %v277_v61 = vmax.f32 %v275_v21, %v276_v54 }
 0x1e7   : > { %796 = vpow2.f32 %v176_v4  ;;  %v278_v4 = vrot.slane %v277_v61, 2 }
 0x1e9   : > { %v279_v22 = vmax.f32 %v277_v61, %v278_v4 }
 0x1ea   : > { %v173_v7 = vpop.xlane.xlu0 %172 }
 0x1eb   : > { %v175_v8 = vsub.f32 %v167_v58, %v173_v7  ;;  %v280_v58 = vrot.slane %v279_v22, 1 }
 0x1ed   : > { %v797_v16 = vpop.eup %796  ;;  %v178_v53 = vmul.f32 1.442695, %v175_v8  ;;  %v281_v23 = vmax.f32 %v279_v22, %v280_v58 }
 0x1ee   : > { %v180_v12 = vsel %vm88_vm0, %v797_v16, 0.0 }
 0x1ef   : > { %798 = vpow2.f32 %v178_v53  ;;  %181 = vadd.xlane.f32.xlu1 %v180_v12  ;;  %v283_v8 = vsub.f32 %v274_v60, %v281_v23  ;;  %v282_v16 = vsub.f32 %v273_v20, %v281_v23 }
 0x1f1   : > { %v286_v24 = vmul.f32 1.442695, %v283_v8  ;;  %v284_v53 = vmul.f32 1.442695, %v282_v16 }
 0x1f3   : > { %800 = vpow2.f32 %v286_v24 }
 0x1f4   : > { %802 = vpow2.f32 %v284_v53 }
 0x1f5   : > { %v799_v19 = vpop.eup %798 }
 0x1f6   : > { %v183_v56 = vsel %vm88_vm0, %v799_v19, 0.0 }
 0x1f7   : > { %184 = vadd.xlane.f32.xlu1 %v183_v56 }
 0x1f9   : > { %v801_v12 = vpop.eup %800 }
 0x1fa   : > { %308 = vmatpush.msra.mxu1 %v801_v12  ;;  %v803_v19 = vpop.eup %802 }
 0x1fc   : > { %309 = vmatpush.msra.mxu1 %v803_v19 }
 0x1fd   : > { %657 = vmatmul.msk.f32.vlgmr.msra.gmra.mxu1 %vm88_vm0, %v1170_v57 }
 0x205   : > { %658 = vmatmul.msk.f32.gmra.mxu1 %vm88_vm0, %v1172_v59 }
 0x262   : > { %v182_v21 = vpop.xlane.xlu1 %181 }
 0x263   : > { %804 = vlog2.f32 %v182_v21 }
 0x269   : > { %v805_v56 = vpop.eup %804 }
 0x26a   : > { %v187_v22 = vmul.f32 0.6931472, %v805_v56  ;;  %v185_v60 = vpop.xlane.xlu1 %184 }
 0x26b   : > { %806 = vlog2.f32 %v185_v60 }
 0x26c   : > { %v1336_v5 = vadd.f32 %v187_v22, %v170_v5  }
 0x26e   : > { %v1476_v20 = vmov %v1336_v5 }
 0x26f   : > { %v192_v24 = vadd.f32 %v1476_v20, %v1316_v14 }
 0x271   : > { %v1341_v54 = vsub.f32 %v192_v24, %v1238_v9  ;;  %v807_v61 = vpop.eup %806 }
 0x272   : > { %v189_v4 = vmul.f32 0.6931472, %v807_v61 }
 0x273   : > { %655 = vmatmul.msk.f32.vlgmr.msra.gmra.mxu0 %vm88_vm0, %v1341_v54 }
 0x274   : > { %v1345_v4 = vadd.f32 %v189_v4, %v173_v7   ;;  %v317_v7 = vadd.f32 %v281_v23, %v1164_v52 }
 0x276   : > { %v1477_v58 = vmov %v1345_v4  ;;  %v318_v4 = vadd.f32 %v281_v23, %v1167_v55 }
 0x277   : > { %v193_v8 = vadd.f32 %v1477_v58, %v1316_v14 }
 0x279   : > { %v1350_v16 = vsub.f32 %v193_v8, %v1241_v11 }
 0x27a   : > { %v311_v5 = vpop.f32.mrf.mxu1 }
 0x27b   : > { %656 = vmatmul.msk.f32.gmra.mxu0 %vm88_vm0, %v1350_v16  ;;  %v319_v53 = vmax.f32 %v311_v5, 1e-37 }
 0x27d   : > { %808 = vlog2.f32 %v319_v53 }
 0x282   : > { %v314_v9 = vpop.f32.mrf.mxu1 }
 0x283   : > { %v320_v12 = vmax.f32 %v314_v9, 1e-37  ;;  %v809_v19 = vpop.eup %808 }
 0x284   : > { %v322_v21 = vmul.f32 0.6931472, %v809_v19 }
 0x285   : > { %810 = vlog2.f32 %v320_v12 }
 0x286   : > { %v325_v56 = vadd.f32 %v322_v21, %v317_v7 }
 0x28b   : > { %v811_v22 = vpop.eup %810 }
 0x28c   : > { %v324_v11 = vmul.f32 0.6931472, %v811_v22 }
 0x28e   : > { %v326_v8 = vadd.f32 %v324_v11, %v318_v4 }
 0x2f0   : > { %v267_v60 = vpop.f32.mrf.mxu0 }
 0x2f1   : > { %v327_v24 = vadd.f32 %v928_v3, %v267_v60 }
 0x2f3   : > { %v329_v61 = vadd.f32 %v327_v24, %v325_v56 }
 0x2f5   : > { %v1357_v3 = vmul.f32 0.5, %v329_v61  }
 0x2f7   : > { %349 = vmatmul.f32.vlgmr.msra.gmra.mxu2 %v1357_v3  ;;  %v437_v12 = vsub.f32 0.0, %v1357_v3 }
 0x2f8   : > { %v270_v5 = vpop.f32.mrf.mxu0 }
 0x2f9   : > { %v328_v53 = vadd.f32 %v924_v2, %v270_v5 }
 0x2fb   : > { %v330_v9 = vadd.f32 %v328_v53, %v326_v8 }
 0x2fd   : > { %v1361_v2 = vmul.f32 0.5, %v330_v9  }
 0x2ff   : > { %352 = vmatmul.f32.gmra.mxu2 %v1361_v2  ;;  %v438_v19 = vsub.f32 0.0, %v1361_v2 }
 0x301   : > { %v439_v21 = vmax.f32 %v437_v12, %v438_v19 }
 0x303   : > { %v440_v7 = vrot.slane %v439_v21, 4 }
 0x305   : > { %v441_v23 = vmax.f32 %v439_v21, %v440_v7 }
 0x307   : > { %v442_v56 = vrot.slane %v441_v23, 2 }
 0x309   : > { %v443_v22 = vmax.f32 %v441_v23, %v442_v56  ;;  %v520_v56 = vsub.f32 %v1316_v14, %v940_v6 }
 0x30b   : > { %v444_v60 = vrot.slane %v443_v22, 1 }
 0x30d   : > { %v445_v24 = vmax.f32 %v443_v22, %v444_v60  ;;  %v521_v22 = vand.u32 2147483647, %v520_v56 }
 0x30f   : > { %v447_v11 = vsub.f32 %v438_v19, %v445_v24  ;;  %v446_v61 = vsub.f32 %v437_v12, %v445_v24  ;;  %v522_v60 = vsel %vm88_vm0, %v521_v22, -inf }
 0x310   : > { %523 = vmax.xlane.f32.xlu2 %v522_v60 }
 0x311   : > { %v450_v4 = vmul.f32 1.442695, %v447_v11  ;;  %v448_v5 = vmul.f32 1.442695, %v446_v61 }
 0x313   : > { %812 = vpow2.f32 %v450_v4 }
 0x314   : > { %814 = vpow2.f32 %v448_v5 }
 0x319   : > { %v813_v8 = vpop.eup %812 }
 0x31a   : > { %472 = vmatpush.msrb.mxu1 %v813_v8  ;;  %v815_v53 = vpop.eup %814 }
 0x31c   : > { %473 = vmatpush.msrb.mxu1 %v815_v53 }
 0x31d   : > { %677 = vmatmul.msk.f32.vlgmr.msrb.gmra.mxu1 %vm88_vm0, %v990_v15 }
 0x31e   : > { %497 = vmatpush.msra.mxu1 %v1162_v51 }
 0x320   : > { %498 = vmatpush.msra.mxu1 %v1157_v50 }
 0x322   : > { %499 = vmatpush.msra.mxu1 %v1152_v49 }
 0x324   : > { %500 = vmatpush.msra.mxu1 %v1147_v48 }
 0x325   : > { %678 = vmatmul.msk.f32.gmra.mxu1 %vm88_vm0, %v1082_v35 }
 0x326   : > { %501 = vmatpush.msra.mxu1 %v1142_v47 }
 0x328   : > { %502 = vmatpush.msra.mxu1 %v1137_v46 }
 0x32a   : > { %503 = vmatpush.msra.mxu1 %v1132_v45 }
 0x32c   : > { %504 = vmatpush.msra.mxu1 %v1127_v44 }
 0x32e   : > { %505 = vmatpush.msra.mxu1 %v1122_v43 }
 0x330   : > { %506 = vmatpush.msra.mxu1 %v1117_v42 }
 0x332   : > { %507 = vmatpush.msra.mxu1 %v1112_v41 }
 0x334   : > { %508 = vmatpush.msra.mxu1 %v1107_v40 }
 0x336   : > { %509 = vmatpush.msra.mxu1 %v1102_v39 }
 0x338   : > { %510 = vmatpush.msra.mxu1 %v1097_v38 }
 0x33a   : > { %511 = vmatpush.msra.mxu1 %v1092_v37 }
 0x33c   : > { %512 = vmatpush.msra.mxu1 %v1087_v36 }
 0x37a   : > { %v350_v9 = vpop.f32.mrf.mxu2  }
 0x37b   : > { %v356_v12 = vsub.f32 %v912_v63, %v350_v9 }
 0x37d   : > { %v358_v19 = vadd.f32 %v356_v12, %v1341_v54 }
 0x37f   : > { %675 = vmatmul.msk.f32.vlgmr.msra.gmra.mxu3 %vm88_vm0, %v358_v19 }
 0x382   : > { %v353_v21 = vpop.f32.mrf.mxu2  }
 0x383   : > { %v357_v7 = vsub.f32 %v908_v62, %v353_v21  ;;  %v524_v19 = vpop.xlane.xlu2 %523 }
 0x384   : > { %680 = vpush %v524_v19 }
 0x385   : > { %v359_v23 = vadd.f32 %v357_v7, %v1350_v16  ;;  %v481_v16 = vadd.f32 %v445_v24, %v984_v10 }
 0x387   : > { %676 = vmatmul.msk.f32.gmra.mxu3 %vm88_vm0, %v359_v23  ;;  %v482_v23 = vadd.f32 %v445_v24, %v987_v13 }
 0x39a   : > { %v475_v11 = vpop.f32.mrf.mxu1 }
 0x39b   : > { %v483_v63 = vmax.f32 %v475_v11, 1e-37 }
 0x39d   : > { %816 = vlog2.f32 %v483_v63  ;;  %v1483_v63 = vmov %v350_v9 }
 0x3a2   : > { %v478_v54 = vpop.f32.mrf.mxu1 }
 0x3a3   : > { %v484_v61 = vmax.f32 %v478_v54, 1e-37  ;;  %v817_v4 = vpop.eup %816 }
 0x3a4   : > { %v486_v62 = vmul.f32 0.6931472, %v817_v4  ;;  %v1484_v4 = vmov %v1477_v58 }
 0x3a5   : > { %818 = vlog2.f32 %v484_v61 }
 0x3a6   : > { %v489_v8 = vadd.f32 %v486_v62, %v481_v16  ;;  %v1482_v62 = vmov %v353_v21 }
 0x3ab   : > { %v819_v6 = vpop.eup %818 }
 0x3ac   : > { %v488_v7 = vmul.f32 0.6931472, %v819_v6  ;;  %v1486_v6 = vmov %v1316_v14 }
 0x3ae   : > { %v490_v60 = vadd.f32 %v488_v7, %v482_v23 }
 0x3b5   : > { %s681_s0 = spop %680 }
 0x3b6   : > { %p526_p1 = scmp.lt.f32.partialorder %s681_s0, 1e-06 }
 0x3b8   : > { %p1401_p2 = pnand %p527_p0, %p526_p1 }
 0x3ba   : > { %p129_p4 = pnand %p1401_p2, %p1405_p3 }
 0x3bb   :  { %s946_s2 = smov (%p129_p4), [#allocation2]   ;;  %s586_s9 = sshll.u32 (%p129_p4), %s1457_s4, 4  ;;  %s587_s9 = int_to_ptr.hbm [resolvable:$true] %s586_s9 }
 0x3bc   :  { %s584_s6 = sshll.u32 (%p129_p4), %s946_s2, 4  ;;  %s947_s10 = smov (%p129_p4), 128   ;;  %s585_s6 = int_to_ptr.vmem [resolvable:$true] %s584_s6 }
 0x3bd   :  { %s948_s11 = smov (%p129_p4), 8  }
 0x402   : > { %v431_v5 = vpop.f32.mrf.mxu3 }
 0x403   : > { %v491_v53 = vadd.f32 %v920_v1, %v431_v5  ;;  %v1485_v5 = vmov %v1476_v20 }
 0x405   : > { %v493_v12 = vadd.f32 %v491_v53, %v489_v8 }
 0x407   : > { %v495_v1 = vmul.f32 0.5, %v493_v12  }
 0x409   : > { %513 = vmatmul.f32.vlgmr.msra.gmra.mxu1 %v495_v1 }
 0x40a   : > { %v434_v56 = vpop.f32.mrf.mxu3 }
 0x40b   : > { %v492_v22 = vadd.f32 %v916_v0, %v434_v56 }
 0x40d   : > { %v494_v11 = vadd.f32 %v492_v22, %v490_v60 }
 0x40f   : > { %v496_v0 = vmul.f32 0.5, %v494_v11  }
 0x411   : > { %516 = vmatmul.f32.gmra.mxu1 %v496_v0 }
 0x486   : > { %v514_v54 = vpop.f32.mrf.mxu1  }
 0x487   : > { %v1481_v61 = vmov %v514_v54  ;;  %v532_v24 = vadd.f32 (%p129_p4), %v514_v54, %v350_v9 }
 0x489   :  { %v534_v53 = vsub.f32 (%p129_p4), %v532_v24, %v995_v17 }
 0x48b   :  { %132 = sbr.rel (!%p129_p4) target bundleno = 305 (0x131), region = 43  ;;  %v536_v12 = vsub.f32 (%p129_p4), %v534_v53, %v1316_v14 }
 0x48d   :  { %v538_v7 = vsub.f32 (%p129_p4), %v536_v12, %v1476_v20 }
 0x48e   : > { %v517_v16 = vpop.f32.mrf.mxu1  }
 0x48f   : > { %v1480_v60 = vmov %v517_v16  ;;  %v533_v8 = vadd.f32 (%p129_p4), %v517_v16, %v353_v21  ;;  %v540_v56 = vmin.f32 (%p129_p4), %v538_v7, 0.0 }
 0x491   :  { %v535_v6 = vsub.f32 %v533_v8, %v1000_v18  ;;  %v542_v22 = vmul.f32 1.442695, %v540_v56 }
 0x493   :  { %v537_v19 = vsub.f32 %v535_v6, %v1316_v14  ;;  %820 = vpow2.f32 %v542_v22 }
 0x495   :  { %v539_v23 = vsub.f32 %v537_v19, %v1477_v58 }
 0x497   :  { %v541_v11 = vmin.f32 %v539_v23, 0.0 }
 0x499   :  { %v544_v0 = vmul.f32 1.442695, %v541_v11  ;;  %v821_v1 = vpop.eup %820 }
 0x49a   :  { %546 = vxpose.xlu0.b32.start [1/2] (short) (narrow) %v821_v1, 16 }
 0x49b   :  { %822 = vpow2.f32 %v544_v0 }
 0x4a1   :  { %v823_v10 = vpop.eup %822 }
 0x4a2   :  { %547 = vxpose.xlu0.b32.end [2/2] (short) (narrow) %v823_v10, 16 }
 0x53e   :  { %v562_v13 = vpop.trf.xlu0 }
 0x53f   :  { %578 = vst.msk [vmem:[#allocation2] sm:$0xff] %vm88_vm0, %v562_v13 }
 0x546   :  { %v563_v15 = vpop.trf.xlu0 }
 0x547   :  { %579 = vst.msk [vmem:[#allocation2 + $0x8] sm:$0xff] %vm88_vm0, %v563_v15 }
 0x548   :  { %592 = dma.vmem_to_hbm [thread:$0]  %s585_s6, 256, %s587_s9, [#allocation3], %s947_s10, %s947_s10, %s948_s11  }
 0x549   :  { %896 = dma.done.wait [#allocation3], 256  }
 0x54a   :  { %897 = vsyncadd [#allocation3], 4294967040 }
 0x54b   :  { %597 = vsyncpa [#allocation3], 1 }

</bundles_post_ra>
